<compile_context>
chip_gen: v6e
topology: v6e:2x2x1
jax: 0.10.0
libtpu: 0.0.40
codegen_flags: <defaults>
</compile_context>

<pallas_src>
import jax
import jax.numpy as jnp
from jax.experimental import pallas as pl
from jax.experimental.pallas import tpu as pltpu

KMAX = 6          # widest conv kernel (conv3)
CONV_OUT = 256    # 80 + 80 + 96 fused conv output channels
HIDDEN_PAD = 128  # MLP hidden padded 32 -> 128 (lane dense)
OUT_PAD = 128     # final head padded 1 -> 128 (lane-dense store)


def g4_kernel(x_ref, w_ref, mask_ref, cb_ref,
              lw1_ref, lb1_ref, lw2_ref, lb2_ref, out_ref):
    x = x_ref[...]                                   # (TB, L, C), compute dtype
    TB, L, C = x.shape
    T = L - 1                                        # #windows for the K=2 conv

    # im2col: window t = [x[t], x[t+1], ..., x[t+KMAX-1]] (zero-padded past L).
    xp = jnp.concatenate(
        [x, jnp.zeros((TB, KMAX - 1, C), x.dtype)], axis=1)        # (TB, L+5, C)
    win = jnp.concatenate(
        [xp[:, k:k + T, :] for k in range(KMAX)], axis=-1)         # (TB, T, 6C)

    # One fused matmul for all three convs (output cols 0:80 | 80:160 | 160:256).
    conv = jnp.einsum('btk,ko->bto', win, w_ref[...],
                      preferred_element_type=jnp.float32)          # (TB, T, 256)
    conv = conv + mask_ref[...][None]          # -inf on partial/invalid windows
    pooled = jnp.max(conv, axis=1) + cb_ref[...]   # max over time; bias AFTER max

    lw1 = lw1_ref[...]
    h = jnp.dot(pooled.astype(lw1.dtype), lw1,
                preferred_element_type=jnp.float32)
    h = jnp.maximum(h + lb1_ref[...], 0.0)                          # (TB, 128)
    lw2 = lw2_ref[...]
    logit = jnp.dot(h.astype(lw2.dtype), lw2,
                    preferred_element_type=jnp.float32)             # (TB, 128)
    out_ref[...] = jax.nn.sigmoid(logit + lb2_ref[...]).astype(out_ref.dtype)


def _pack_params(p, L, compute_dtype):
    """Fuse / pad parameters into lane-aligned slabs (done once, outside kernel)."""
    C = p['w1'].shape[1]
    T = L - 1

    # Fused conv weight slab (6C, 256): row k*C + c multiplies window elem x[t+k, c].
    slab = jnp.zeros((KMAX * C, CONV_OUT), jnp.float32)
    slab = slab.at[:2 * C, 0:80].set(p['w1'].reshape(2 * C, 80))
    slab = slab.at[:3 * C, 80:160].set(p['w2'].reshape(3 * C, 80))
    slab = slab.at[:, 160:256].set(p['w3'].reshape(6 * C, 96))
    cb = jnp.concatenate([p['b1'], p['b2'], p['b3']], axis=1)        # (1, 256) f32

    # Additive -inf mask on time positions whose window runs past the sequence.
    t = jnp.arange(T, dtype=jnp.int32)[:, None]
    valid_len = jnp.concatenate([
        jnp.full((80,), L - 1, jnp.int32),    # conv1, K=2
        jnp.full((80,), L - 2, jnp.int32),    # conv2, K=3
        jnp.full((96,), L - 5, jnp.int32),    # conv3, K=6
    ])[None, :]
    mask = jnp.where(t < valid_len, 0.0, -jnp.inf).astype(jnp.float32)

    # Lane-dense MLP head: hidden 32 -> 128, output 1 -> 128 (zero padded).
    lw1 = jnp.zeros((CONV_OUT, HIDDEN_PAD), jnp.float32).at[:, :32].set(p['lw1'])
    lb1 = jnp.zeros((1, HIDDEN_PAD), jnp.float32).at[:, :32].set(p['lb1'])
    lw2 = jnp.zeros((HIDDEN_PAD, OUT_PAD), jnp.float32).at[:32, :1].set(p['lw2'])
    lb2 = jnp.zeros((1, OUT_PAD), jnp.float32).at[:, :1].set(p['lb2'])

    return dict(w=slab.astype(compute_dtype), mask=mask, cb=cb,
                lw1=lw1.astype(compute_dtype), lb1=lb1,
                lw2=lw2.astype(compute_dtype), lb2=lb2)


def g4_detector(x, params, *, batch_tile=256, compute_dtype=jnp.float32):
    """x: (B, L, C) one-hot sequence (PyTorch input before its .transpose(1, 2))."""
    B, L, C = x.shape
    assert L >= KMAX, "sequence length must cover the widest conv kernel"
    T = L - 1
    p = _pack_params(params, L, compute_dtype)

    # Batch tiling: single step for small B, sublane-aligned tiles otherwise.
    tb = B if B <= batch_tile else max(8, (batch_tile // 8) * 8)
    Bp = ((B + tb - 1) // tb) * tb                     # pad batch to tile multiple
    xc = x.astype(compute_dtype)
    if Bp != B:
        xc = jnp.concatenate(
            [xc, jnp.zeros((Bp - B, L, C), compute_dtype)], axis=0)

    const = lambda i: (0, 0)                           # weights stay VMEM-resident
    out = pl.pallas_call(
        g4_kernel,
        out_shape=jax.ShapeDtypeStruct((Bp, OUT_PAD), jnp.float32),
        grid=(Bp // tb,),
        in_specs=[
            pl.BlockSpec((tb, L, C), lambda i: (i, 0, 0)),       # x, batch tiled
            pl.BlockSpec((KMAX * C, CONV_OUT), const),           # fused conv weights
            pl.BlockSpec((T, CONV_OUT), const),                  # -inf time mask
            pl.BlockSpec((1, CONV_OUT), const),                  # fused conv bias
            pl.BlockSpec((CONV_OUT, HIDDEN_PAD), const),         # lw1 (padded)
            pl.BlockSpec((1, HIDDEN_PAD), const),                # lb1 (padded)
            pl.BlockSpec((HIDDEN_PAD, OUT_PAD), const),          # lw2 (padded)
            pl.BlockSpec((1, OUT_PAD), const),                   # lb2 (padded)
        ],
        out_specs=pl.BlockSpec((tb, OUT_PAD), lambda i: (i, 0)),
        compiler_params=pltpu.CompilerParams(
            dimension_semantics=("parallel",)),
    )(xc, p['w'], p['mask'], p['cb'], p['lw1'], p['lb1'], p['lw2'], p['lb2'])
    return out[:B, :1]


def init_params(key, onehot_len):
    """Deterministic PyTorch-style uniform(-1/sqrt(fan_in), +1/sqrt(fan_in))."""
    ks = jax.random.split(key, 10)

    def u(k, shape, fan_in):
        bound = 1.0 / float(fan_in) ** 0.5
        return jax.random.uniform(k, shape, jnp.float32, -bound, bound)

    C = onehot_len
    return {
        # Conv1d(C, 80, 2): PyTorch weight (80, C, 2) stored transposed as (2, C, 80)
        'w1': u(ks[0], (2, C, 80), C * 2), 'b1': u(ks[1], (1, 80), C * 2),
        # Conv1d(C, 80, 3)
        'w2': u(ks[2], (3, C, 80), C * 3), 'b2': u(ks[3], (1, 80), C * 3),
        # Conv1d(C, 96, 6)
        'w3': u(ks[4], (6, C, 96), C * 6), 'b3': u(ks[5], (1, 96), C * 6),
        # Linear(256, 32)
        'lw1': u(ks[6], (256, 32), 256), 'lb1': u(ks[7], (1, 32), 256),
        # Linear(32, 1)
        'lw2': u(ks[8], (32, 1), 32), 'lb2': u(ks[9], (1, 1), 32),
    }


def g4_reference(x, p):
    """Plain-JAX reference of the same math (== PyTorch forward semantics)."""
    x = x.astype(jnp.float32)
    B, L, C = x.shape

    def conv_then_max(w, b):
        K, _, O = w.shape
        T = L - K + 1
        acc = jnp.zeros((B, T, O), jnp.float32)
        for k in range(K):
            acc = acc + jnp.einsum('btc,co->bto', x[:, k:k + T, :], w[k])
        return jnp.max(acc + b[None], axis=1)

    feat = jnp.concatenate([conv_then_max(p['w1'], p['b1']),
                            conv_then_max(p['w2'], p['b2']),
                            conv_then_max(p['w3'], p['b3'])], axis=1)
    h = jnp.maximum(feat @ p['lw1'] + p['lb1'], 0.0)
    return jax.nn.sigmoid(h @ p['lw2'] + p['lb2'])


if __name__ == "__main__":
    key = jax.random.PRNGKey(0)
    k_x, k_p, k_x2 = jax.random.split(key, 3)

    B, L, ONEHOT = 2, 16, 4          # batch=2, seq=16, DNA one-hot of width 4
    ids = jax.random.randint(k_x, (B, L), 0, ONEHOT)
    x = jax.nn.one_hot(ids, ONEHOT, dtype=jnp.float32)
    params = init_params(k_p, ONEHOT)

    # f32 path, single grid step.
    out = jax.block_until_ready(g4_detector(x, params, compute_dtype=jnp.float32))
    ref = g4_reference(x, params)
    assert out.shape == (B, 1)
    assert jnp.allclose(out, ref, atol=1e-5, rtol=1e-5), (out, ref)

    # Multi-step batch grid + bf16 operand path (accumulation stays f32).
    B2 = 256
    ids2 = jax.random.randint(k_x2, (B2, L), 0, ONEHOT)
    x2 = jax.nn.one_hot(ids2, ONEHOT, dtype=jnp.float32)
    out2 = jax.block_until_ready(
        g4_detector(x2, params, batch_tile=128, compute_dtype=jnp.bfloat16))
    ref2 = g4_reference(x2, params)
    assert out2.shape == (B2, 1)
    assert jnp.allclose(out2, ref2, atol=2e-2, rtol=2e-2), (out2, ref2)

    print("KERNEL_OK")
</pallas_src>

<mosaic_0001>
module attributes {stable_mosaic.version = 11 : i64} {
  func.func @g4_kernel(%arg0: i32, %arg1: memref<2x16x4xf32, #tpu.memory_space<vmem>>, %arg2: memref<24x256xf32, #tpu.memory_space<vmem>>, %arg3: memref<15x256xf32, #tpu.memory_space<vmem>>, %arg4: memref<1x256xf32, #tpu.memory_space<vmem>>, %arg5: memref<256x128xf32, #tpu.memory_space<vmem>>, %arg6: memref<1x128xf32, #tpu.memory_space<vmem>>, %arg7: memref<128x128xf32, #tpu.memory_space<vmem>>, %arg8: memref<1x128xf32, #tpu.memory_space<vmem>>, %arg9: memref<2x128xf32, #tpu.memory_space<vmem>>) attributes {dimension_semantics = [#tpu.dimension_semantics<parallel>], iteration_bounds = array<i64: 1>, scalar_prefetch = 0 : i64, scratch_operands = 0 : i64, tpu.core_type = #tpu.core_type<tc>, window_params = [{transform_indices = @transform_0, window_bounds = array<i64: 2, 16, 4>}, {pipeline_mode = #tpu.pipeline_mode<synchronous>, transform_indices = @transform_1, window_bounds = array<i64: 24, 256>}, {pipeline_mode = #tpu.pipeline_mode<synchronous>, transform_indices = @transform_2, window_bounds = array<i64: 15, 256>}, {pipeline_mode = #tpu.pipeline_mode<synchronous>, transform_indices = @transform_3, window_bounds = array<i64: 1, 256>}, {pipeline_mode = #tpu.pipeline_mode<synchronous>, transform_indices = @transform_4, window_bounds = array<i64: 256, 128>}, {pipeline_mode = #tpu.pipeline_mode<synchronous>, transform_indices = @transform_5, window_bounds = array<i64: 1, 128>}, {pipeline_mode = #tpu.pipeline_mode<synchronous>, transform_indices = @transform_6, window_bounds = array<i64: 128, 128>}, {pipeline_mode = #tpu.pipeline_mode<synchronous>, transform_indices = @transform_7, window_bounds = array<i64: 1, 128>}, {transform_indices = @transform_8, window_bounds = array<i64: 2, 128>}]} {
    %c0 = arith.constant 0 : index
    %c0_0 = arith.constant 0 : index
    %c0_1 = arith.constant 0 : index
    %0 = vector.load %arg1[%c0, %c0_0, %c0_1] : memref<2x16x4xf32, #tpu.memory_space<vmem>>, vector<2x16x4xf32>
    %cst = arith.constant 0.000000e+00 : f32
    %1 = vector.broadcast %cst : f32 to vector<2x5x4xf32>
    %2 = tpu.concatenate %0, %1 in 1 : vector<2x16x4xf32>, vector<2x5x4xf32> -> vector<2x21x4xf32>
    %3 = vector.extract_strided_slice %2 {offsets = [0, 0, 0], sizes = [2, 15, 4], strides = [1, 1, 1]} : vector<2x21x4xf32> to vector<2x15x4xf32>
    %4 = vector.extract_strided_slice %2 {offsets = [0, 1, 0], sizes = [2, 15, 4], strides = [1, 1, 1]} : vector<2x21x4xf32> to vector<2x15x4xf32>
    %5 = vector.extract_strided_slice %2 {offsets = [0, 2, 0], sizes = [2, 15, 4], strides = [1, 1, 1]} : vector<2x21x4xf32> to vector<2x15x4xf32>
    %6 = vector.extract_strided_slice %2 {offsets = [0, 3, 0], sizes = [2, 15, 4], strides = [1, 1, 1]} : vector<2x21x4xf32> to vector<2x15x4xf32>
    %7 = vector.extract_strided_slice %2 {offsets = [0, 4, 0], sizes = [2, 15, 4], strides = [1, 1, 1]} : vector<2x21x4xf32> to vector<2x15x4xf32>
    %8 = vector.extract_strided_slice %2 {offsets = [0, 5, 0], sizes = [2, 15, 4], strides = [1, 1, 1]} : vector<2x21x4xf32> to vector<2x15x4xf32>
    %9 = tpu.concatenate %3, %4, %5, %6, %7, %8 in 2 : vector<2x15x4xf32>, vector<2x15x4xf32>, vector<2x15x4xf32>, vector<2x15x4xf32>, vector<2x15x4xf32>, vector<2x15x4xf32> -> vector<2x15x24xf32>
    %c0_2 = arith.constant 0 : index
    %c0_3 = arith.constant 0 : index
    %10 = vector.load %arg2[%c0_2, %c0_3] : memref<24x256xf32, #tpu.memory_space<vmem>>, vector<24x256xf32>
    "tpu.trace_start"() <{level = 10 : i32, message = "btk,ko->bto"}> : () -> ()
    %cst_4 = arith.constant dense<0.000000e+00> : vector<2x15x256xf32>
    %11 = tpu.matmul %9, %10, %cst_4 {dimension_numbers = #tpu.dot_dimension_numbers<[2], [0], [0, 1], [1], [0, 0, 0, 1, 1, 1], [], []>} : vector<2x15x24xf32>, vector<24x256xf32>, vector<2x15x256xf32> -> vector<2x15x256xf32>
    "tpu.trace_stop"() : () -> ()
    %c0_5 = arith.constant 0 : index
    %c0_6 = arith.constant 0 : index
    %12 = vector.load %arg3[%c0_5, %c0_6] : memref<15x256xf32, #tpu.memory_space<vmem>>, vector<15x256xf32>
    %13 = vector.shape_cast %12 : vector<15x256xf32> to vector<1x15x256xf32>
    %14 = vector.broadcast %13 : vector<1x15x256xf32> to vector<2x15x256xf32>
    %15 = arith.addf %11, %14 : vector<2x15x256xf32>
    %cst_7 = arith.constant dense<0xFF800000> : vector<2x256xf32>
    %16 = vector.multi_reduction <maximumf>, %15, %cst_7 [1] : vector<2x15x256xf32> to vector<2x256xf32>
    %c0_8 = arith.constant 0 : index
    %c0_9 = arith.constant 0 : index
    %17 = vector.load %arg4[%c0_8, %c0_9] : memref<1x256xf32, #tpu.memory_space<vmem>>, vector<1x256xf32>
    %18 = vector.broadcast %17 : vector<1x256xf32> to vector<2x256xf32>
    %19 = arith.addf %16, %18 : vector<2x256xf32>
    %c0_10 = arith.constant 0 : index
    %c0_11 = arith.constant 0 : index
    %20 = vector.load %arg5[%c0_10, %c0_11] : memref<256x128xf32, #tpu.memory_space<vmem>>, vector<256x128xf32>
    %cst_12 = arith.constant dense<0.000000e+00> : vector<2x128xf32>
    %21 = tpu.matmul %19, %20, %cst_12 {dimension_numbers = #tpu.dot_dimension_numbers<[1], [0], [0], [1], [0, 0, 1, 1], [], []>} : vector<2x256xf32>, vector<256x128xf32>, vector<2x128xf32> -> vector<2x128xf32>
    %c0_13 = arith.constant 0 : index
    %c0_14 = arith.constant 0 : index
    %22 = vector.load %arg6[%c0_13, %c0_14] : memref<1x128xf32, #tpu.memory_space<vmem>>, vector<1x128xf32>
    %23 = vector.broadcast %22 : vector<1x128xf32> to vector<2x128xf32>
    %24 = arith.addf %21, %23 : vector<2x128xf32>
    %cst_15 = arith.constant 0.000000e+00 : f32
    %25 = vector.broadcast %cst_15 : f32 to vector<2x128xf32>
    %26 = arith.maximumf %24, %25 : vector<2x128xf32>
    %c0_16 = arith.constant 0 : index
    %c0_17 = arith.constant 0 : index
    %27 = vector.load %arg7[%c0_16, %c0_17] : memref<128x128xf32, #tpu.memory_space<vmem>>, vector<128x128xf32>
    %cst_18 = arith.constant dense<0.000000e+00> : vector<2x128xf32>
    %28 = tpu.matmul %26, %27, %cst_18 {dimension_numbers = #tpu.dot_dimension_numbers<[1], [0], [0], [1], [0, 0, 1, 1], [], []>} : vector<2x128xf32>, vector<128x128xf32>, vector<2x128xf32> -> vector<2x128xf32>
    %c0_19 = arith.constant 0 : index
    %c0_20 = arith.constant 0 : index
    %29 = vector.load %arg8[%c0_19, %c0_20] : memref<1x128xf32, #tpu.memory_space<vmem>>, vector<1x128xf32>
    %30 = vector.broadcast %29 : vector<1x128xf32> to vector<2x128xf32>
    %31 = arith.addf %28, %30 : vector<2x128xf32>
    %32 = arith.negf %31 : vector<2x128xf32>
    %33 = math.exp %32 : vector<2x128xf32>
    %cst_21 = arith.constant 1.000000e+00 : f32
    %34 = vector.broadcast %cst_21 : f32 to vector<2x128xf32>
    %35 = arith.addf %34, %33 : vector<2x128xf32>
    %36 = arith.divf %34, %35 : vector<2x128xf32>
    %c0_22 = arith.constant 0 : index
    %c0_23 = arith.constant 0 : index
    %37 = vector.load %arg9[%c0_22, %c0_23] : memref<2x128xf32, #tpu.memory_space<vmem>>, vector<2x128xf32>
    tpu.vector_store %arg9[%c0_22, %c0_23], %36 {strides = array<i32>} : memref<2x128xf32, #tpu.memory_space<vmem>>, vector<2x128xf32>,
    return
  }
  func.func @transform_0(%arg0: i32) -> (i32, i32, i32) {
    %c0_i32 = arith.constant 0 : i32
    %c0_i32_0 = arith.constant 0 : i32
    %c0_i32_1 = arith.constant 0 : i32
    return %arg0, %c0_i32, %c0_i32_0 : i32, i32, i32
  }
  func.func @transform_1(%arg0: i32) -> (i32, i32) {
    %c0_i32 = arith.constant 0 : i32
    %c0_i32_0 = arith.constant 0 : i32
    %c0_i32_1 = arith.constant 0 : i32
    return %c0_i32, %c0_i32_0 : i32, i32
  }
  func.func @transform_2(%arg0: i32) -> (i32, i32) {
    %c0_i32 = arith.constant 0 : i32
    %c0_i32_0 = arith.constant 0 : i32
    %c0_i32_1 = arith.constant 0 : i32
    return %c0_i32, %c0_i32_0 : i32, i32
  }
  func.func @transform_3(%arg0: i32) -> (i32, i32) {
    %c0_i32 = arith.constant 0 : i32
    %c0_i32_0 = arith.constant 0 : i32
    %c0_i32_1 = arith.constant 0 : i32
    return %c0_i32, %c0_i32_0 : i32, i32
  }
  func.func @transform_4(%arg0: i32) -> (i32, i32) {
    %c0_i32 = arith.constant 0 : i32
    %c0_i32_0 = arith.constant 0 : i32
    %c0_i32_1 = arith.constant 0 : i32
    return %c0_i32, %c0_i32_0 : i32, i32
  }
  func.func @transform_5(%arg0: i32) -> (i32, i32) {
    %c0_i32 = arith.constant 0 : i32
    %c0_i32_0 = arith.constant 0 : i32
    %c0_i32_1 = arith.constant 0 : i32
    return %c0_i32, %c0_i32_0 : i32, i32
  }
  func.func @transform_6(%arg0: i32) -> (i32, i32) {
    %c0_i32 = arith.constant 0 : i32
    %c0_i32_0 = arith.constant 0 : i32
    %c0_i32_1 = arith.constant 0 : i32
    return %c0_i32, %c0_i32_0 : i32, i32
  }
  func.func @transform_7(%arg0: i32) -> (i32, i32) {
    %c0_i32 = arith.constant 0 : i32
    %c0_i32_0 = arith.constant 0 : i32
    %c0_i32_1 = arith.constant 0 : i32
    return %c0_i32, %c0_i32_0 : i32, i32
  }
  func.func @transform_8(%arg0: i32) -> (i32, i32) {
    %c0_i32 = arith.constant 0 : i32
    %c0_i32_0 = arith.constant 0 : i32
    return %arg0, %c0_i32 : i32, i32
  }
}

</mosaic_0001>

<bundles_post_ra>
// kernel: tpu_custom_call.1
= control target key start
LH: loop header
LB: loop body
LE: loop exit
PB: predicated region body
PF: predicated region fallthrough
CT: control target
= control target key end

     0   :  { %13 = vsyncpa [#allocation3], 0  ;;  %s2433_s0 = inlined_call_operand.vmem [shape: f32[2,16,4], index: 0, kind: input, shape index: {}]   ;;  %s2434_s1 = inlined_call_operand.hbm [shape: f32[24,256], index: 1, kind: input, shape index: {}]   ;;  %s2435_s2 = inlined_call_operand.vmem [shape: f32[15,256], index: 2, kind: input, shape index: {}]   ;;  %s2436_s3 = inlined_call_operand.vmem [shape: f32[1,256], index: 3, kind: input, shape index: {}]   ;;  %s2437_s4 = inlined_call_operand.hbm [shape: f32[256,128], index: 4, kind: input, shape index: {}]   ;;  %s2438_s5 = inlined_call_operand.vmem [shape: f32[1,128], index: 5, kind: input, shape index: {}]   ;;  %s2439_s6 = inlined_call_operand.hbm [shape: f32[128,128], index: 6, kind: input, shape index: {}]   ;;  %s2440_s7 = inlined_call_operand.vmem [shape: f32[1,128], index: 7, kind: input, shape index: {}]   ;;  %s2441_s8 = inlined_call_operand.hbm [shape: f32[2,128], index: 8, kind: output, shape index: {}]  }
   0x1   :  { %14 = vsyncpa [#allocation6], 0 }
   0x2   :  { %15 = vsyncpa [#allocation4], 0  ;;  %s2045_s27 = smov [#allocation5]  }
   0x3   :  { %s39_s28 = sshll.u32 %s2045_s27, 4  ;;  %s40_s28 = int_to_ptr.vmem [resolvable:$true] %s39_s28 }
   0x4   :  { %s1967_s29 = scalar_lea.vmem %s40_s28, 4096  ;;  %p1972_p1 = scmp.lt.s32.totalorder %s40_s28, %s40_s28 }
   0x5   :  { %p1968_p0 = scmp.ne.s32.totalorder %s40_s28, %s1967_s29  ;;  %p1973_p2 = scmp.lt.s32.totalorder %s1967_s29, %s1967_s29 }
   0x7   :  { %p1974_p3 = por %p1973_p2, %p1972_p1 }
   0x9   :  { %p1975_p4 = pnand %p1974_p3, %p1968_p0 }
   0xb   :  { %1978 = shalt.err (!%p1975_p4)
}
   0xc   :  { %s2046_s30 = smov 128   ;;  %s2047_s9 = smov 8  }
   0xd   :  { %45 = dma.hbm_to_vmem [thread:$0]  %s2437_s4, 4096, %s40_s28, [#allocation6], %s2046_s30, %s2046_s30, %s2047_s9  }
   0xe   :  { %s2048_s12 = smov [#allocation2]  }
   0xf   :  { %s23_s13 = sshll.u32 %s2048_s12, 4  ;;  %s24_s13 = int_to_ptr.vmem [resolvable:$true] %s23_s13 }
  0x10   :  { %s1987_s14 = scalar_lea.vmem %s24_s13, 768  ;;  %p1992_p6 = scmp.lt.s32.totalorder %s24_s13, %s24_s13 }
  0x11   :  { %p1988_p5 = scmp.ne.s32.totalorder %s24_s13, %s1987_s14  ;;  %p1993_p7 = scmp.lt.s32.totalorder %s1987_s14, %s1987_s14 }
  0x13   :  { %p1994_p8 = por %p1993_p7, %p1992_p6 }
  0x15   :  { %p1995_p9 = pnand %p1994_p8, %p1988_p5 }
  0x17   :  { %1998 = shalt.err (!%p1995_p9)
}
  0x18   :  { %s2049_s15 = smov 256   ;;  %s2050_s16 = smov 16  }
  0x19   :  { %29 = dma.hbm_to_vmem [thread:$0]  %s2434_s1, 768, %s24_s13, [#allocation3], %s2049_s15, %s2049_s15, %s2050_s16  }
  0x1a   :  { %s2051_s19 = smov [#allocation7]  }
  0x1b   :  { %s53_s20 = sshll.u32 %s2051_s19, 4  ;;  %s54_s20 = int_to_ptr.vmem [resolvable:$true] %s53_s20 }
  0x1c   :  { %s2007_s4 = scalar_lea.vmem %s54_s20, 2048  ;;  %p2012_p11 = scmp.lt.s32.totalorder %s54_s20, %s54_s20 }
  0x1d   :  { %p2008_p10 = scmp.ne.s32.totalorder %s54_s20, %s2007_s4  ;;  %p2013_p12 = scmp.lt.s32.totalorder %s2007_s4, %s2007_s4 }
  0x1f   :  { %p2014_p13 = por %p2013_p12, %p2012_p11 }
  0x21   :  { %p2015_p0 = pnand %p2014_p13, %p2008_p10 }
  0x23   :  { %2018 = shalt.err (!%p2015_p0)
}
  0x24   :  { %59 = dma.hbm_to_vmem [thread:$0]  %s2439_s6, 2048, %s54_s20, [#allocation6], %s2046_s30, %s2046_s30, %s2047_s9  }
  0x25   :  { %2039 = dma.done.wait [#allocation3], 768  }
  0x26   :  { %2040 = vsyncadd [#allocation3], 4294966528 }
  0x27   :  { %2041 = dma.done.wait [#allocation6], 6144  }
  0x28   :  { %2042 = vsyncadd [#allocation6], 4294961152  ;;  %v2052_v0 = vmov 0.0   ;;  %v2120_v1 = vld [vmem:[%s2433_s0 + $0x8] sm:$0xff]  ;;  %v2125_v2 = vld [vmem:[%s2433_s0] sm:$0xff]  ;;  %vm121_vm0 = vcmask 1044480   ;;  %v230_v57 = vlaneseq }
  0x29   :  { %1046 = vmatprep.mubr.f32.mxu0 %v2052_v0  ;;  %vm79_vm1 = vcmask 1046528   ;;  %v81_v3 = vrot.slane %v2120_v1, 1  ;;  %v122_v4 = vrot.slane %v2125_v2, 3  ;;  %v123_v5 = vrot.slane %v2120_v1, 3  ;;  %s2053_s6 = smov 4   ;;  %s2054_s26 = smov 12  }
  0x2a   :  { %v80_v6 = vrot.slane %v2125_v2, 1  ;;  %vm143_vm2 = vcmask 1043456   ;;  %v144_v7 = vrot.slane %v2125_v2, 4  ;;  %v145_v8 = vrot.slane %v2120_v1, 4  ;;  %v2145_v16 = vld [vmem:[%s2433_s0 + $0x10] sm:$0xff]  ;;  %v2150_v17 = vld [vmem:[%s2433_s0 + $0x18] sm:$0xff] }
  0x2b   :  { %88 = vrot.lane.b32.xlu0 %v81_v3, %s2053_s6  ;;  %v124_v9 = vsel %vm121_vm0, %v122_v4, %v123_v5  ;;  %v100_v11 = vrot.slane %v2125_v2, 2  ;;  %v101_v12 = vrot.slane %v2120_v1, 2  ;;  %vm99_vm3 = vcmask 1045504   ;;  %s2055_s10 = smov 20   ;;  %v217_v28 = vld [vmem:[#allocation2 + $0x28] sm:$0xff]  ;;  %v216_v29 = vld [vmem:[#allocation2 + $0x20] sm:$0xff] }
  0x2c   :  { %131 = vrot.lane.b32.xlu1 %v124_v9, %s2054_s26  ;;  %v82_v10 = vsel %vm79_vm1, %v80_v6, %v81_v3  ;;  %v146_v13 = vsel %vm143_vm2, %v144_v7, %v145_v8  ;;  %v166_v14 = vrot.slane %v2125_v2, 5  ;;  %v167_v15 = vrot.slane %v2120_v1, 5  ;;  %1008 = vmatprep.subr.mxu0 %v217_v28  ;;  %v215_v32 = vld [vmem:[#allocation2 + $0x18] sm:$0xff]  ;;  %v214_v36 = vld [vmem:[#allocation2 + $0x10] sm:$0xff]  ;;  %v213_v37 = vld [vmem:[#allocation2 + $0x8] sm:$0xff]  ;;  %s2058_s4 = smov [#allocation8]  }
  0x2d   :  { %vm165_vm4 = vcmask 1042432   ;;  %v102_v18 = vsel %vm99_vm3, %v100_v11, %v101_v12  ;;  %v103_v19 = vrot.slane %v2052_v0, 2  ;;  %v83_v21 = vrot.slane %v2145_v16, 1  ;;  %1009 = vmatpush1.msra.mxu0 %v216_v29  ;;  %v212_v40 = vld [vmem:[#allocation2] sm:$0xff]  ;;  %s1822_s21 = sshll.u32 %s2058_s4, 4  ;;  %s1823_s21 = int_to_ptr.vmem [resolvable:$true] %s1822_s21 }
  0x2e   :  { %v168_v20 = vsel %vm165_vm4, %v166_v14, %v167_v15  ;;  %v84_v22 = vrot.slane %v2150_v17, 1  ;;  %v125_v24 = vrot.slane %v2052_v0, 3  ;;  %v105_v26 = vrot.slane %v2145_v16, 2  ;;  %1010 = vmatprep.subr.mxu0 %v215_v32  ;;  %p2024_p2 = scmp.lt.s32.totalorder %s1823_s21, %s1823_s21 }
  0x2f   :  { %86 = vrot.lane.b32.xlu0 %v82_v10, %s2053_s6  ;;  %v104_v23 = vsel %vm99_vm3, %v101_v12, %v103_v19  ;;  %v106_v27 = vrot.slane %v2150_v17, 2  ;;  %v147_v31 = vrot.slane %v2052_v0, 4  ;;  %v127_v34 = vrot.slane %v2145_v16, 3  ;;  %1011 = vmatpush1.msra.mxu0 %v214_v36 }
  0x30   :  { %153 = vrot.lane.b32.xlu1 %v146_v13, %s2050_s16  ;;  %v85_v25 = vsel %vm79_vm1, %v83_v21, %v84_v22  ;;  %v126_v30 = vsel %vm121_vm0, %v123_v5, %v125_v24  ;;  %v128_v35 = vrot.slane %v2150_v17, 3  ;;  %v169_v39 = vrot.slane %v2052_v0, 5  ;;  %1012 = vmatprep.subr.mxu0 %v213_v37 }
  0x31   :  { %v107_v33 = vsel %vm99_vm3, %v105_v26, %v106_v27  ;;  %v148_v38 = vsel %vm143_vm2, %v145_v8, %v147_v31  ;;  %v149_v42 = vrot.slane %v2145_v16, 4  ;;  %v150_v43 = vrot.slane %v2150_v17, 4  ;;  %1013 = vmatpush1.msra.mxu0 %v212_v40 }
  0x32   :  { %v129_v41 = vsel %vm121_vm0, %v127_v34, %v128_v35  ;;  %1900 = vmatprep.subr.mxu0 %v2052_v0  ;;  %v170_v44 = vsel %vm165_vm4, %v167_v15, %v169_v39  ;;  %v171_v45 = vrot.slane %v2145_v16, 5  ;;  %v172_v46 = vrot.slane %v2150_v17, 5 }
  0x33   :  { %109 = vrot.lane.b32.xlu0 %v102_v18, %s2047_s9  ;;  %v151_v47 = vsel %vm143_vm2, %v149_v42, %v150_v43  ;;  %v108_v49 = vsel %vm99_vm3, %v106_v27, %v103_v19  ;;  %v130_v50 = vsel %vm121_vm0, %v128_v35, %v125_v24  ;;  %v152_v51 = vsel %vm143_vm2, %v150_v43, %v147_v31 }
  0x34   :  { %175 = vrot.lane.b32.xlu1 %v168_v20, %s2055_s10  ;;  %v173_v48 = vsel %vm165_vm4, %v171_v45, %v172_v46  ;;  %v174_v52 = vsel %vm165_vm4, %v172_v46, %v169_v39  ;;  %v2056_v55 = vmov 1966171168   ;;  %v2200_v61 = vshrl.u32 %v230_v57, 7 }
  0x35   :  { %v228_v56 = vunpack.c.l.s4 %v2056_v55  ;;  %vm192_vm5 = vcmask 64512   ;;  %vm187_vm6 = vcmask 31744   ;;  %vm197_vm7 = vcmask 97280  }
  0x36   :  { %vm202_vm8 = vcmask 130048   ;;  %vm207_vm9 = vcmask 162816   ;;  %vm973_vm10 = vcmask 195584   ;;  %vm1639_vm11 = vcmask 1041409  }
  0x37   :  { %111 = vrot.lane.b32.xlu0 %v104_v23, %s2047_s9  ;;  %v229_v60 = vunpack.c.0.s8 %v228_v56  ;;  %vm2057_vm12 = vmmov 0  }
  0x38   :  { %90 = vrot.lane.b32.xlu1 %v85_v25, %s2053_s6 }
  0x39   :  { %v2206_v4 = vsub.s32 %v229_v60, %v2200_v61 }
  0x3b   :  { %133 = vrot.lane.b32.xlu0 %v126_v30, %s2054_s26 }
  0x3c   :  { %113 = vrot.lane.b32.xlu1 %v107_v33, %s2047_s9 }
  0x3f   :  { %155 = vrot.lane.b32.xlu0 %v148_v38, %s2050_s16 }
  0x40   :  { %135 = vrot.lane.b32.xlu1 %v129_v41, %s2054_s26 }
  0x43   :  { %177 = vrot.lane.b32.xlu0 %v170_v44, %s2055_s10 }
  0x44   :  { %157 = vrot.lane.b32.xlu1 %v151_v47, %s2050_s16 }
  0x47   :  { %179 = vrot.lane.b32.xlu0 %v173_v48, %s2055_s10 }
  0x48   :  { %92 = vrot.lane.b32.xlu1 %v84_v22, %s2053_s6 }
  0x4b   :  { %115 = vrot.lane.b32.xlu0 %v108_v49, %s2047_s9 }
  0x4c   :  { %137 = vrot.lane.b32.xlu1 %v130_v50, %s2054_s26 }
  0x4f   :  { %159 = vrot.lane.b32.xlu0 %v152_v51, %s2050_s16 }
  0x50   :  { %181 = vrot.lane.b32.xlu1 %v174_v52, %s2055_s10 }
  0x9d   :  { %v89_v53 = vpop.permute.xlu0 %88 }
  0x9e   :  { %v132_v54 = vpop.permute.xlu1 %131  ;;  %v189_v25 = vsel %vm187_vm6, %v2120_v1, %v89_v53 }
  0xa1   :  { %v87_v58 = vpop.permute.xlu0 %86 }
  0xa2   :  { %v154_v59 = vpop.permute.xlu1 %153  ;;  %v188_v62 = vsel %vm187_vm6, %v2125_v2, %v87_v58 }
  0xa5   :  { %v110_v63 = vpop.permute.xlu0 %109 }
  0xa6   :  { %v193_v3 = vsel %vm192_vm5, %v188_v62, %v110_v63  ;;  %v176_v5 = vpop.permute.xlu1 %175 }
  0xa7   :  { %v198_v6 = vsel %vm197_vm7, %v193_v3, %v132_v54 }
  0xa8   :  { %v203_v7 = vsel %vm202_vm8, %v198_v6, %v154_v59 }
  0xa9   :  { %v208_v8 = vsel %vm207_vm9, %v203_v7, %v176_v5  ;;  %v112_v9 = vpop.permute.xlu0 %111 }
  0xaa   :  { %v226_v10 = vcombine.high %v208_v8, %v208_v8  ;;  %v233_v11 = vrot.slane %v208_v8, %v2206_v4  ;;  %v91_v2 = vpop.permute.xlu1 %90  ;;  %v194_v32 = vsel %vm192_vm5, %v189_v25, %v112_v9 }
  0xab   :  { %v190_v38 = vsel %vm187_vm6, %v2145_v16, %v91_v2 }
  0xac   :  { %v240_v12 = vrot.slane %v226_v10, %v2206_v4  ;;  %v241_v13 = vcombine.high %v233_v11, %v233_v11  ;;  %v249_v18 = vrot.slane %v233_v11, %v2206_v4 }
  0xad   :  { %v134_v14 = vpop.permute.xlu0 %133 }
  0xae   :  { %v242_v15 = vcombine.high %v240_v12, %v240_v12  ;;  %v263_v19 = vrot.slane %v241_v13, %v2206_v4  ;;  %v114_v20 = vpop.permute.xlu1 %113  ;;  %v256_v21 = vrot.slane %v240_v12, %v2206_v4  ;;  %v199_v36 = vsel %vm197_vm7, %v194_v32, %v134_v14 }
  0xaf   :  { %v195_v42 = vsel %vm192_vm5, %v190_v38, %v114_v20 }
  0xb0   :  { %v270_v22 = vrot.slane %v242_v15, %v2206_v4  ;;  %v523_v23 = vcombine.low %v249_v18, %v263_v19  ;;  %v1832_v24 = vcombine.high %v249_v18, %v263_v19 }
  0xb1   :  { %v156_v26 = vpop.permute.xlu0 %155 }
  0xb2   :  { %v525_v27 = vcombine.low %v256_v21, %v270_v22  ;;  %v1833_v28 = vcombine.high %v256_v21, %v270_v22  ;;  %v533_v29 = vrot.slane %v523_v23, %v2206_v4  ;;  %v540_v30 = vrot.slane %v1832_v24, %v2206_v4  ;;  %v136_v31 = vpop.permute.xlu1 %135 }
  0xb3   :  { %v204_v37 = vsel %vm202_vm8, %v199_v36, %v156_v26  ;;  %v200_v45 = vsel %vm197_vm7, %v195_v42, %v136_v31 }
  0xb4   :  { %v547_v33 = vrot.slane %v525_v27, %v2206_v4  ;;  %v554_v34 = vrot.slane %v1833_v28, %v2206_v4  ;;  %v555_v35 = vcombine.low %v533_v29, %v540_v30 }
  0xb5   :  { %v178_v1 = vpop.permute.xlu0 %177 }
  0xb6   :  { %v209_v39 = vsel %vm207_vm9, %v204_v37, %v178_v1  ;;  %v158_v40 = vpop.permute.xlu1 %157  ;;  %v556_v41 = vcombine.low %v547_v33, %v554_v34  ;;  %v563_v46 = vrot.slane %v555_v35, %v2206_v4 }
  0xb7   :  { %v275_v43 = vcombine.high %v209_v39, %v209_v39  ;;  %v282_v44 = vrot.slane %v209_v39, %v2206_v4  ;;  %v205_v16 = vsel %vm202_vm8, %v200_v45, %v158_v40 }
  0xb8   :  { %v570_v47 = vrot.slane %v556_v41, %v2206_v4 }
  0xb9   :  { %v289_v48 = vrot.slane %v275_v43, %v2206_v4  ;;  %v290_v49 = vcombine.high %v282_v44, %v282_v44  ;;  %v180_v50 = vpop.permute.xlu0 %179  ;;  %v298_v51 = vrot.slane %v282_v44, %v2206_v4 }
  0xba   :  { %v210_v52 = vsel %vm207_vm9, %v205_v16, %v180_v50  ;;  %v93_v53 = vpop.permute.xlu1 %92  ;;  %v571_v54 = vcombine.low %v563_v46, %v570_v47 }
  0xbb   :  { %v291_v55 = vcombine.high %v289_v48, %v289_v48  ;;  %v305_v56 = vrot.slane %v289_v48, %v2206_v4  ;;  %v312_v57 = vrot.slane %v290_v49, %v2206_v4  ;;  %v323_v58 = vcombine.high %v210_v52, %v210_v52 }
  0xbc   :  { %v330_v59 = vrot.slane %v210_v52, %v2206_v4  ;;  %1838 = vmatmul.mubr.msk.f32.vlgmr.msra.gmra.mxu0 %vm973_vm10, %v571_v54  ;;  %v191_v9 = vsel %vm187_vm6, %v2150_v17, %v93_v53 }
  0xbd   :  { %v319_v60 = vrot.slane %v291_v55, %v2206_v4  ;;  %v572_v62 = vcombine.low %v298_v51, %v312_v57  ;;  %v1834_v63 = vcombine.high %v298_v51, %v312_v57  ;;  %v321_v3 = vcombine.high %v305_v56, %v305_v56  ;;  %v116_v5 = vpop.permute.xlu0 %115  ;;  %1052 = vmatprep.mubr.f32.mxu0 %v2052_v0 }
  0xbe   :  { %v337_v6 = vrot.slane %v323_v58, %v2206_v4  ;;  %v338_v7 = vcombine.high %v330_v59, %v330_v59  ;;  %v346_v8 = vrot.slane %v330_v59, %v2206_v4  ;;  %v138_v10 = vpop.permute.xlu1 %137  ;;  %v196_v13 = vsel %vm192_vm5, %v191_v9, %v116_v5 }
  0xbf   :  { %v574_v11 = vcombine.low %v305_v56, %v319_v60  ;;  %v582_v2 = vrot.slane %v572_v62, %v2206_v4  ;;  %v589_v12 = vrot.slane %v1834_v63, %v2206_v4  ;;  %v201_v17 = vsel %vm197_vm7, %v196_v13, %v138_v10  ;;  %v1626_v10 = vld [vmem:[#allocation5 + $0xf8] sm:$0xff]  ;;  %v1624_v13 = vld [vmem:[#allocation5 + $0xe8] sm:$0xff] }
  0xc0   :  { %v339_v14 = vcombine.high %v337_v6, %v337_v6  ;;  %v353_v15 = vrot.slane %v337_v6, %v2206_v4  ;;  %v360_v18 = vrot.slane %v338_v7, %v2206_v4  ;;  %v575_v20 = vcombine.low %v321_v3, %v346_v8  ;;  %1848 = vmatprep.subr.mxu1 %v1626_v10 }
  0xc1   :  { %v596_v19 = vrot.slane %v574_v11, %v2206_v4  ;;  %v160_v21 = vpop.permute.xlu0 %159  ;;  %v368_v22 = vcombine.high %v346_v8, %v346_v8  ;;  %v604_v25 = vcombine.low %v582_v2, %v589_v12  ;;  %v1610_v11 = vld [vmem:[#allocation5 + $0x78] sm:$0xff]  ;;  %v1625_v2 = vld [vmem:[#allocation5 + $0xf0] sm:$0xff] }
  0xc2   :  { %v370_v23 = vcombine.high %v360_v18, %v360_v18  ;;  %v182_v24 = vpop.permute.xlu1 %181  ;;  %v603_v26 = vrot.slane %v575_v20, %v2206_v4  ;;  %v206_v27 = vsel %vm202_vm8, %v201_v17, %v160_v21  ;;  %v367_v28 = vrot.slane %v339_v14, %v2206_v4  ;;  %1849 = vmatpush3.msra.mxu1 %v1610_v11  ;;  %v1609_v12 = vld [vmem:[#allocation5 + $0x70] sm:$0xff]  ;;  %v1608_v14 = vld [vmem:[#allocation5 + $0x68] sm:$0xff]  ;;  %v1606_v20 = vld [vmem:[#allocation5 + $0x58] sm:$0xff] }
  0xc3   :  { %v369_v29 = vcombine.high %v353_v15, %v353_v15  ;;  %v211_v31 = vsel %vm207_vm9, %v206_v27, %v182_v24  ;;  %v621_v35 = vcombine.low %v360_v18, %v368_v22  ;;  %v612_v42 = vrot.slane %v604_v25, %v2206_v4  ;;  %1850 = vmatprep.subr.mxu1 %v1625_v2  ;;  %v1607_v18 = vld [vmem:[#allocation5 + $0x60] sm:$0xff]  ;;  %v1621_v21 = vld [vmem:[#allocation5 + $0xd0] sm:$0xff]  ;;  %v1604_v17 = vld [vmem:[#allocation5 + $0x48] sm:$0xff] }
  0xc4   :  { %v622_v30 = vcombine.low %v370_v23, %v353_v15  ;;  %v605_v32 = vcombine.low %v596_v19, %v603_v26  ;;  %v372_v33 = vcombine.high %v211_v31, %v211_v31  ;;  %v379_v34 = vrot.slane %v211_v31, %v2206_v4  ;;  %1851 = vmatpush3.msra.mxu1 %v1609_v12  ;;  %v1623_v15 = vld [vmem:[#allocation5 + $0xe0] sm:$0xff]  ;;  %v1622_v19 = vld [vmem:[#allocation5 + $0xd8] sm:$0xff]  ;;  %v1605_v22 = vld [vmem:[#allocation5 + $0x50] sm:$0xff] }
  0xc5   :  { %v623_v39 = vcombine.low %v367_v28, %v369_v29  ;;  %v371_v41 = vcombine.high %v367_v28, %v367_v28  ;;  %v631_v47 = vrot.slane %v621_v35, %v2206_v4  ;;  %1852 = vmatprep.subr.mxu1 %v1624_v13  ;;  %v1620_v23 = vld [vmem:[#allocation5 + $0xc8] sm:$0xff]  ;;  %v1619_v24 = vld [vmem:[#allocation5 + $0xc0] sm:$0xff]  ;;  %v1618_v26 = vld [vmem:[#allocation5 + $0xb8] sm:$0xff] }
  0xc6   :  { %v386_v36 = vrot.slane %v372_v33, %v2206_v4  ;;  %v387_v37 = vcombine.high %v379_v34, %v379_v34  ;;  %v395_v1 = vrot.slane %v379_v34, %v2206_v4  ;;  %v619_v38 = vrot.slane %v605_v32, %v2206_v4  ;;  %1853 = vmatpush3.msra.mxu1 %v1608_v14  ;;  %v1603_v25 = vld [vmem:[#allocation5 + $0x40] sm:$0xff]  ;;  %v1602_v27 = vld [vmem:[#allocation5 + $0x38] sm:$0xff]  ;;  %v1617_v28 = vld [vmem:[#allocation5 + $0xb0] sm:$0xff] }
  0xc7   :  { %v638_v40 = vrot.slane %v622_v30, %v2206_v4  ;;  %v645_v53 = vrot.slane %v623_v39, %v2206_v4  ;;  %1854 = vmatprep.subr.mxu1 %v1623_v15  ;;  %v1601_v29 = vld [vmem:[#allocation5 + $0x30] sm:$0xff]  ;;  %v1616_v30 = vld [vmem:[#allocation5 + $0xa8] sm:$0xff]  ;;  %v1615_v32 = vld [vmem:[#allocation5 + $0xa0] sm:$0xff] }
  0xc8   :  { %v388_v43 = vcombine.high %v386_v36, %v386_v36  ;;  %v402_v44 = vrot.slane %v386_v36, %v2206_v4  ;;  %v409_v45 = vrot.slane %v387_v37, %v2206_v4  ;;  %v417_v46 = vcombine.high %v395_v1, %v395_v1  ;;  %1855 = vmatpush3.msra.mxu1 %v1607_v18  ;;  %v1600_v31 = vld [vmem:[#allocation5 + $0x28] sm:$0xff]  ;;  %v1599_v33 = vld [vmem:[#allocation5 + $0x20] sm:$0xff]  ;;  %v1614_v34 = vld [vmem:[#allocation5 + $0x98] sm:$0xff] }
  0xc9   :  { %v624_v48 = vcombine.low %v371_v41, %v395_v1  ;;  %v620_v49 = vcombine.low %v612_v42, %v619_v38  ;;  %v653_v55 = vcombine.low %v631_v47, %v638_v40  ;;  %1856 = vmatprep.subr.mxu1 %v1622_v19  ;;  %v1598_v35 = vld [vmem:[#allocation5 + $0x18] sm:$0xff]  ;;  %v1613_v36 = vld [vmem:[#allocation5 + $0x90] sm:$0xff]  ;;  %v1612_v1 = vld [vmem:[#allocation5 + $0x88] sm:$0xff] }
  0xca   :  { %v416_v16 = vrot.slane %v388_v43, %v2206_v4  ;;  %v418_v50 = vcombine.high %v402_v44, %v402_v44  ;;  %v419_v51 = vcombine.high %v409_v45, %v409_v45  ;;  %v670_v52 = vcombine.low %v409_v45, %v417_v46  ;;  %1857 = vmatpush3.msra.mxu1 %v1606_v20  ;;  %v1597_v37 = vld [vmem:[#allocation5 + $0x10] sm:$0xff]  ;;  %v1596_v38 = vld [vmem:[#allocation5 + $0x8] sm:$0xff]  ;;  %v1611_v39 = vld [vmem:[#allocation5 + $0x80] sm:$0xff] }
  0xcb   :  { %v652_v54 = vrot.slane %v624_v48, %v2206_v4  ;;  %1839 = vmatmul.mubr.msk.f32.gmra.mxu0 %vm973_vm10, %v620_v49  ;;  %v661_v63 = vrot.slane %v653_v55, %v2206_v4  ;;  %1858 = vmatprep.subr.mxu1 %v1621_v21  ;;  %v1595_v40 = vld [vmem:[#allocation5] sm:$0xff]  ;;  %v1731_v41 = vld [vmem:[#allocation7 + $0x78] sm:$0xff]  ;;  %v1730_v42 = vld [vmem:[#allocation7 + $0x70] sm:$0xff] }
  0xcc   :  { %v671_v56 = vcombine.low %v419_v51, %v402_v44  ;;  %v672_v57 = vcombine.low %v416_v16, %v418_v50  ;;  %1058 = vmatprep.mubr.f32.mxu0 %v2052_v0  ;;  %v679_v59 = vrot.slane %v670_v52, %v2206_v4  ;;  %1859 = vmatpush3.msra.mxu1 %v1605_v22  ;;  %v1729_v43 = vld [vmem:[#allocation7 + $0x68] sm:$0xff]  ;;  %v1728_v44 = vld [vmem:[#allocation7 + $0x60] sm:$0xff]  ;;  %v1727_v45 = vld [vmem:[#allocation7 + $0x58] sm:$0xff] }
  0xcd   :  { %v654_v58 = vcombine.low %v645_v53, %v652_v54  ;;  %1860 = vmatprep.subr.mxu1 %v1620_v23  ;;  %1901 = vmatpush3.msra.mxu0 %v1731_v41  ;;  %v1726_v46 = vld [vmem:[#allocation7 + $0x50] sm:$0xff]  ;;  %v1725_v47 = vld [vmem:[#allocation7 + $0x48] sm:$0xff]  ;;  %v1724_v48 = vld [vmem:[#allocation7 + $0x40] sm:$0xff] }
  0xce   :  { %v686_v60 = vrot.slane %v671_v56, %v2206_v4  ;;  %v693_v62 = vrot.slane %v672_v57, %v2206_v4  ;;  %1861 = vmatpush3.msra.mxu1 %v1604_v17  ;;  %1902 = vmatprep.subr.mxu0 %v2052_v0  ;;  %v1723_v49 = vld [vmem:[#allocation7 + $0x38] sm:$0xff]  ;;  %v1722_v16 = vld [vmem:[#allocation7 + $0x30] sm:$0xff]  ;;  %v1721_v52 = vld [vmem:[#allocation7 + $0x28] sm:$0xff] }
  0xcf   :  { %v668_v3 = vrot.slane %v654_v58, %v2206_v4  ;;  %1862 = vmatprep.subr.mxu1 %v1619_v24  ;;  %1903 = vmatpush3.msra.mxu0 %v1730_v42  ;;  %v1949_v50 = vld [vmem:[%s2435_s2] ss:$8 sps:$4 sm:$0xff]   ;;  %v1951_v51 = vld [vmem:[%s2435_s2 + $0x4] ss:$8 sps:$4 sm:$0xff]  }
  0xd0   :  { %v694_v5 = vcombine.low %v679_v59, %v686_v60  ;;  %v708_v8 = vrot.slane %v693_v62, %v2206_v4  ;;  %1863 = vmatpush3.msra.mxu1 %v1603_v25  ;;  %1904 = vmatprep.subr.mxu0 %v2052_v0  ;;  %v432_v53 = vrot.slane %v1949_v50, %v2206_v4  ;;  %v1952_v62 = vld [vmem:[%s2435_s2 + $0x10] ss:$8 sps:$4 sm:$0xff]  }
  0xd1   :  { %v669_v6 = vcombine.low %v661_v63, %v668_v3  ;;  %1864 = vmatprep.subr.mxu1 %v1618_v26  ;;  %1905 = vmatpush3.msra.mxu0 %v1729_v43  ;;  %v439_v54 = vrot.slane %v1951_v51, %v2206_v4  ;;  %v1954_v63 = vld [vmem:[%s2435_s2 + $0x14] ss:$8 sps:$4 sm:$0x77]  }
  0xd2   :  { %v701_v7 = vrot.slane %v694_v5, %v2206_v4  ;;  %1865 = vmatpush3.msra.mxu1 %v1602_v27  ;;  %1906 = vmatprep.subr.mxu0 %v2052_v0  ;;  %v440_v55 = vcombine.high %v432_v53, %v432_v53  ;;  %v448_v57 = vrot.slane %v432_v53, %v2206_v4 }
  0xd3   :  { %1840 = vmatmul.mubr.msk.f32.gmra.mxu0 %vm973_vm10, %v669_v6  ;;  %1866 = vmatprep.subr.mxu1 %v1617_v28  ;;  %v441_v56 = vcombine.high %v439_v54, %v439_v54  ;;  %v455_v59 = vrot.slane %v439_v54, %v2206_v4 }
  0xd4   :  { %1064 = vmatprep.mubr.f32.mxu0 %v2052_v0  ;;  %v709_v9 = vcombine.low %v701_v7, %v708_v8  ;;  %1867 = vmatpush3.msra.mxu1 %v1601_v29  ;;  %v462_v58 = vrot.slane %v440_v55, %v2206_v4  ;;  %v482_v8 = vrot.slane %v1952_v62, %v2206_v4 }
  0xd5   :  { %1868 = vmatprep.subr.mxu1 %v1616_v30  ;;  %1907 = vmatpush3.msra.mxu0 %v1728_v44  ;;  %v469_v60 = vrot.slane %v441_v56, %v2206_v4 }
  0xd6   :  { %1869 = vmatpush3.msra.mxu1 %v1600_v31  ;;  %1908 = vmatprep.subr.mxu0 %v2052_v0  ;;  %v710_v3 = vcombine.low %v448_v57, %v462_v58  ;;  %v1835_v5 = vcombine.high %v448_v57, %v462_v58  ;;  %v490_v13 = vcombine.high %v482_v8, %v482_v8 }
  0xd7   :  { %1841 = vmatmul.mubr.msk.f32.gmra.mxu0 %vm973_vm10, %v709_v9  ;;  %1870 = vmatprep.subr.mxu1 %v1615_v32  ;;  %v712_v6 = vcombine.low %v455_v59, %v469_v60  ;;  %v1836_v7 = vcombine.high %v455_v59, %v469_v60  ;;  %v489_v9 = vrot.slane %v1954_v63, %v2206_v4 }
  0xd8   :  { %1871 = vmatpush3.msra.mxu1 %v1599_v33  ;;  %1909 = vmatpush3.msra.mxu0 %v1727_v45  ;;  %v720_v10 = vrot.slane %v710_v3, %v2206_v4  ;;  %v727_v11 = vrot.slane %v1835_v5, %v2206_v4  ;;  %v498_v22 = vrot.slane %v482_v8, %v2206_v4 }
  0xd9   :  { %1872 = vmatprep.subr.mxu1 %v1614_v34  ;;  %1910 = vmatprep.subr.mxu0 %v2052_v0  ;;  %v734_v2 = vrot.slane %v712_v6, %v2206_v4  ;;  %v741_v12 = vrot.slane %v1836_v7, %v2206_v4  ;;  %v491_v18 = vcombine.high %v489_v9, %v489_v9 }
  0xda   :  { %1873 = vmatpush3.msra.mxu1 %v1598_v35  ;;  %1911 = vmatpush3.msra.mxu0 %v1726_v46  ;;  %v743_v14 = vcombine.high %v720_v10, %v727_v11  ;;  %v505_v19 = vrot.slane %v489_v9, %v2206_v4  ;;  %v742_v20 = vcombine.low %v720_v10, %v727_v11 }
  0xdb   :  { %1874 = vmatprep.subr.mxu1 %v1613_v36  ;;  %1912 = vmatprep.subr.mxu0 %v2052_v0  ;;  %v745_v15 = vcombine.high %v734_v2, %v741_v12  ;;  %v744_v21 = vcombine.low %v734_v2, %v741_v12  ;;  %v512_v23 = vrot.slane %v490_v13, %v2206_v4 }
  0xdc   :  { %1875 = vmatpush3.msra.mxu1 %v1597_v37  ;;  %1913 = vmatpush3.msra.mxu0 %v1725_v47  ;;  %v759_v17 = vrot.slane %v743_v14, %v2206_v4  ;;  %v519_v25 = vrot.slane %v491_v18, %v2206_v4  ;;  %v521_v26 = vcombine.high %v505_v19, %v505_v19 }
  0xdd   :  { %1876 = vmatprep.subr.mxu1 %v1612_v1  ;;  %1914 = vmatprep.subr.mxu0 %v2052_v0  ;;  %v773_v24 = vrot.slane %v745_v15, %v2206_v4  ;;  %v752_v27 = vrot.slane %v742_v20, %v2206_v4  ;;  %v766_v28 = vrot.slane %v744_v21, %v2206_v4 }
  0xde   :  { %1877 = vmatpush3.msra.mxu1 %v1596_v38  ;;  %1915 = vmatpush3.msra.mxu0 %v1724_v48  ;;  %v776_v29 = vcombine.low %v498_v22, %v512_v23  ;;  %v1837_v31 = vcombine.high %v498_v22, %v512_v23  ;;  %v778_v32 = vcombine.low %v505_v19, %v519_v25 }
  0xdf   :  { %1878 = vmatprep.subr.mxu1 %v1611_v39  ;;  %1916 = vmatprep.subr.mxu0 %v2052_v0  ;;  %v775_v30 = vcombine.low %v759_v17, %v773_v24  ;;  %v779_v33 = vcombine.low %v521_v26, %v448_v57  ;;  %v774_v35 = vcombine.low %v752_v27, %v766_v28 }
  0xe0   :  { %1879 = vmatpush3.msra.mxu1 %v1595_v40  ;;  %1917 = vmatpush3.msra.mxu0 %v1723_v49  ;;  %v786_v36 = vrot.slane %v776_v29, %v2206_v4  ;;  %v470_v1 = vcombine.high %v448_v57, %v448_v57  ;;  %v471_v38 = vcombine.high %v455_v59, %v455_v59 }
  0xe1   :  { %1918 = vmatprep.subr.mxu0 %v2052_v0  ;;  %v472_v39 = vcombine.high %v462_v58, %v462_v58  ;;  %v473_v40 = vcombine.high %v469_v60, %v469_v60  ;;  %v793_v42 = vrot.slane %v1837_v31, %v2206_v4  ;;  %v800_v43 = vrot.slane %v778_v32, %v2206_v4 }
  0xe2   :  { %1919 = vmatpush3.msra.mxu0 %v1722_v16  ;;  %v807_v44 = vrot.slane %v779_v33, %v2206_v4  ;;  %v842_v46 = vcombine.low %v462_v58, %v470_v1  ;;  %v844_v48 = vcombine.low %v469_v60, %v471_v38  ;;  %v520_v54 = vcombine.high %v498_v22, %v498_v22 }
  0xe3   :  { %1920 = vmatprep.subr.mxu0 %v2052_v0  ;;  %v843_v47 = vcombine.low %v472_v39, %v455_v59  ;;  %v845_v49 = vcombine.low %v473_v40, %v498_v22  ;;  %v808_v50 = vcombine.low %v786_v36, %v793_v42  ;;  %v522_v55 = vcombine.high %v512_v23, %v512_v23 }
  0xe4   :  { %1921 = vmatpush3.msra.mxu0 %v1721_v52  ;;  %v810_v51 = vcombine.low %v800_v43, %v807_v44  ;;  %v809_v52 = vcombine.high %v786_v36, %v793_v42  ;;  %v811_v53 = vcombine.high %v800_v43, %v807_v44  ;;  %v852_v57 = vrot.slane %v842_v46, %v2206_v4 }
  0xe5   :  { %1922 = vmatprep.subr.mxu0 %v2052_v0  ;;  %v859_v62 = vrot.slane %v843_v47, %v2206_v4  ;;  %v866_v63 = vrot.slane %v844_v48, %v2206_v4  ;;  %v873_v3 = vrot.slane %v845_v49, %v2206_v4  ;;  %v818_v59 = vrot.slane %v808_v50, %v2206_v4 }
  0xe6   :  { %v832_v60 = vrot.slane %v810_v51, %v2206_v4  ;;  %v825_v5 = vrot.slane %v809_v52, %v2206_v4  ;;  %v839_v6 = vrot.slane %v811_v53, %v2206_v4  ;;  %v908_v7 = vcombine.low %v512_v23, %v520_v54  ;;  %1932 = vmatprep.mubr.msk.f32.mxu0 %vm2057_vm12, %v2052_v0 }
  0xe7   :  { %v909_v8 = vcombine.low %v522_v55, %v505_v19  ;;  %v910_v10 = vcombine.low %v519_v25, %v521_v26  ;;  %v874_v11 = vcombine.low %v852_v57, %v859_v62  ;;  %v876_v2 = vcombine.low %v866_v63, %v873_v3 }
  0xe8   :  { %v875_v13 = vcombine.high %v852_v57, %v859_v62  ;;  %v877_v14 = vcombine.high %v866_v63, %v873_v3  ;;  %v840_v15 = vcombine.low %v818_v59, %v832_v60  ;;  %v841_v20 = vcombine.low %v825_v5, %v839_v6 }
  0xe9   :  { %v917_v21 = vrot.slane %v908_v7, %v2206_v4  ;;  %v924_v22 = vrot.slane %v909_v8, %v2206_v4  ;;  %v931_v24 = vrot.slane %v910_v10, %v2206_v4  ;;  %v884_v19 = vrot.slane %v874_v11, %v2206_v4 }
  0xea   :  { %v898_v25 = vrot.slane %v876_v2, %v2206_v4  ;;  %v891_v27 = vrot.slane %v875_v13, %v2206_v4  ;;  %v905_v28 = vrot.slane %v877_v14, %v2206_v4 }
  0xeb   :  { %v932_v31 = vcombine.low %v917_v21, %v924_v22  ;;  %v955_v47 = vrot.slane %v931_v24, %v2206_v4 }
  0xec   :  { %v906_v1 = vcombine.low %v884_v19, %v898_v25 }
 0x17c   :  { %v1048_v34 = vpop.f32.mrf.mxu0 }
 0x17d   :  { %v1049_v45 = vadd.f32 %v1048_v34, %v774_v35  ;;  %v933_v34 = vcombine.high %v917_v21, %v924_v22  ;;  %v934_v35 = vcombine.high %v931_v24, %v931_v24 }
 0x17e   :  { %v1050_v37 = vpop.f32.mrf.mxu0 }
 0x17f   :  { %v1051_v41 = vadd.f32 %v1050_v37, %v775_v30  ;;  %v948_v48 = vrot.slane %v933_v34, %v2206_v4  ;;  %v962_v49 = vrot.slane %v934_v35, %v2206_v4 }
 0x181   :  { %v1079_v16 = vcombine.low %v1049_v45, %v1051_v41  ;;  %v1080_v56 = vcombine.high %v1049_v45, %v1051_v41  ;;  %v907_v41 = vcombine.low %v891_v27, %v905_v28  ;;  %v941_v45 = vrot.slane %v932_v31, %v2206_v4 }
 0x182   :  { %v964_v7 = vcombine.low %v948_v48, %v962_v49 }
 0x183   :  { %v1087_v58 = vrot.slane %v1079_v16, %v2206_v4  ;;  %v1094_v9 = vrot.slane %v1080_v56, %v2206_v4  ;;  %v963_v6 = vcombine.low %v941_v45, %v955_v47 }
 0x185   :  { %v1095_v12 = vcombine.high %v1087_v58, %v1087_v58  ;;  %v1096_v17 = vcombine.high %v1094_v9, %v1094_v9  ;;  %v1103_v32 = vrot.slane %v1087_v58, %v2206_v4  ;;  %v1110_v38 = vrot.slane %v1094_v9, %v2206_v4 }
 0x187   :  { %v1117_v26 = vrot.slane %v1095_v12, %v2206_v4  ;;  %v1124_v33 = vrot.slane %v1096_v17, %v2206_v4 }
 0x189   :  { %v1277_v39 = vcombine.low %v1103_v32, %v1117_v26  ;;  %v1842_v40 = vcombine.high %v1103_v32, %v1117_v26  ;;  %v1279_v46 = vcombine.low %v1110_v38, %v1124_v33  ;;  %v1843_v16 = vcombine.high %v1110_v38, %v1124_v33 }
 0x18b   :  { %v1054_v18 = vpop.f32.mrf.mxu0  ;;  %v1287_v54 = vrot.slane %v1277_v39, %v2206_v4  ;;  %v1294_v55 = vrot.slane %v1842_v40, %v2206_v4  ;;  %v1301_v8 = vrot.slane %v1279_v46, %v2206_v4  ;;  %v1308_v12 = vrot.slane %v1843_v16, %v2206_v4 }
 0x18c   :  { %v1055_v29 = vadd.f32 %v1054_v18, %v840_v15 }
 0x18d   :  { %v1056_v23 = vpop.f32.mrf.mxu0  ;;  %v1309_v13 = vcombine.low %v1287_v54, %v1294_v55  ;;  %v1310_v17 = vcombine.high %v1287_v54, %v1294_v55 }
 0x18e   :  { %v1057_v30 = vadd.f32 %v1056_v23, %v841_v20 }
 0x18f   :  { %v1319_v16 = vrot.slane %v1309_v13, %v2206_v4 }
 0x190   :  { %v1129_v36 = vcombine.low %v1055_v29, %v1057_v30  ;;  %v1130_v37 = vcombine.high %v1055_v29, %v1057_v30  ;;  %v1312_v29 = vcombine.high %v1301_v8, %v1308_v12 }
 0x192   :  { %v1137_v42 = vrot.slane %v1129_v36, %v2206_v4  ;;  %v1144_v43 = vrot.slane %v1130_v37, %v2206_v4  ;;  %v1311_v37 = vcombine.low %v1301_v8, %v1308_v12 }
 0x193   :  { %v1060_v44 = vpop.f32.mrf.mxu0 }
 0x194   :  { %v1145_v50 = vcombine.high %v1137_v42, %v1137_v42  ;;  %v1146_v51 = vcombine.high %v1144_v43, %v1144_v43  ;;  %v1160_v52 = vrot.slane %v1144_v43, %v2206_v4  ;;  %v1061_v56 = vadd.f32 %v1060_v44, %v906_v1 }
 0x195   :  { %v1062_v53 = vpop.f32.mrf.mxu0  ;;  %v1153_v62 = vrot.slane %v1137_v42, %v2206_v4  ;;  %v1326_v42 = vrot.slane %v1310_v17, %v2206_v4  ;;  %v1340_v43 = vrot.slane %v1312_v29, %v2206_v4 }
 0x196   :  { %v1063_v57 = vadd.f32 %v1062_v53, %v907_v41  ;;  %v1167_v63 = vrot.slane %v1145_v50, %v2206_v4  ;;  %v2363_v3 = vrot.slane %v1146_v51, %v2206_v4  ;;  %v1176_v58 = vcombine.high %v1160_v52, %v1160_v52 }
 0x197   :  { %v1066_v59 = vpop.f32.mrf.mxu0  ;;  %v1333_v50 = vrot.slane %v1311_v37, %v2206_v4 }
 0x198   :  { %v1179_v60 = vcombine.low %v1061_v56, %v1063_v57  ;;  %v1180_v5 = vcombine.high %v1061_v56, %v1063_v57  ;;  %v1343_v9 = vcombine.low %v1153_v62, %v1167_v63  ;;  %v1844_v10 = vcombine.high %v1153_v62, %v1167_v63 }
 0x199   :  { %v1345_v11 = vcombine.low %v1160_v52, %v2363_v3  ;;  %v1068_v2 = vpop.f32.mrf.mxu0  ;;  %v1373_v22 = vrot.slane %v1176_v58, %v2206_v4  ;;  %v1067_v36 = vadd.f32 %v1066_v59, %v963_v6  ;;  %v1178_v56 = vcombine.high %v2363_v3, %v2363_v3 }
 0x19a   :  { %v1187_v14 = vrot.slane %v1179_v60, %v2206_v4  ;;  %v1194_v15 = vrot.slane %v1180_v5, %v2206_v4  ;;  %v1352_v18 = vrot.slane %v1343_v9, %v2206_v4  ;;  %v1359_v20 = vrot.slane %v1844_v10, %v2206_v4 }
 0x19b   :  { %v1366_v21 = vrot.slane %v1345_v11, %v2206_v4  ;;  %v1069_v19 = vadd.f32 %v1068_v2, %v964_v7  ;;  %v1342_v63 = vcombine.low %v1326_v42, %v1340_v43  ;;  %v1341_v9 = vcombine.low %v1319_v16, %v1333_v50 }
 0x19c   :  { %v1195_v24 = vcombine.high %v1187_v14, %v1187_v14  ;;  %v1196_v23 = vcombine.high %v1194_v15, %v1194_v15  ;;  %v1374_v25 = vcombine.low %v1352_v18, %v1359_v20  ;;  %v1375_v26 = vcombine.high %v1352_v18, %v1359_v20 }
 0x19d   :  { %v1376_v27 = vcombine.low %v1366_v21, %v1373_v22  ;;  %v1377_v28 = vcombine.high %v1366_v21, %v1373_v22  ;;  %v1203_v30 = vrot.slane %v1187_v14, %v2206_v4  ;;  %v1210_v31 = vrot.slane %v1194_v15, %v2206_v4 }
 0x19e   :  { %v1217_v32 = vrot.slane %v1195_v24, %v2206_v4  ;;  %v1384_v33 = vrot.slane %v1374_v25, %v2206_v4  ;;  %v1224_v35 = vrot.slane %v1196_v23, %v2206_v4  ;;  %v1391_v1 = vrot.slane %v1375_v26, %v2206_v4 }
 0x19f   :  { %v1398_v34 = vrot.slane %v1376_v27, %v2206_v4  ;;  %v1405_v38 = vrot.slane %v1377_v28, %v2206_v4  ;;  %v1229_v40 = vcombine.low %v1067_v36, %v1069_v19  ;;  %v1230_v41 = vcombine.high %v1067_v36, %v1069_v19 }
 0x1a0   :  { %v1227_v39 = vcombine.high %v1217_v32, %v1217_v32  ;;  %v1225_v44 = vcombine.high %v1203_v30, %v1203_v30  ;;  %v1226_v45 = vcombine.high %v1210_v31, %v1210_v31  ;;  %v1228_v47 = vcombine.high %v1224_v35, %v1224_v35 }
 0x1a1   :  { %v1406_v46 = vcombine.low %v1384_v33, %v1398_v34  ;;  %v1237_v48 = vrot.slane %v1229_v40, %v2206_v4  ;;  %v1244_v49 = vrot.slane %v1230_v41, %v2206_v4  ;;  %v1407_v52 = vcombine.low %v1391_v1, %v1405_v38 }
 0x1a2   :  { %v1410_v51 = vcombine.low %v1227_v39, %v1210_v31  ;;  %v1409_v57 = vcombine.low %v1217_v32, %v1225_v44  ;;  %v1411_v62 = vcombine.low %v1224_v35, %v1226_v45  ;;  %v1408_v6 = vcombine.low %v1178_v56, %v1203_v30 }
 0x1a3   :  { %v1245_v53 = vcombine.high %v1237_v48, %v1237_v48  ;;  %v1246_v54 = vcombine.high %v1244_v49, %v1244_v49  ;;  %v1253_v55 = vrot.slane %v1237_v48, %v2206_v4  ;;  %v1547_v5 = vsel %vm79_vm1, %v1406_v46, -inf }
 0x1a4   :  { %v1432_v7 = vrot.slane %v1410_v51, %v2206_v4  ;;  %v1555_v8 = vsel %vm79_vm1, %v1407_v52, -inf  ;;  %v1260_v10 = vrot.slane %v1244_v49, %v2206_v4  ;;  %v1425_v12 = vrot.slane %v1409_v57, %v2206_v4 }
 0x1a5   :  { %v1267_v58 = vrot.slane %v1245_v53, %v2206_v4  ;;  %v1275_v59 = vcombine.high %v1253_v55, %v1253_v55  ;;  %v1474_v60 = vcombine.low %v1228_v47, %v1253_v55  ;;  %v1274_v11 = vrot.slane %v1246_v54, %v2206_v4 }
 0x1a6   :  { %v1439_v13 = vrot.slane %v1411_v62, %v2206_v4  ;;  %v1556_v14 = vmax.f32 %v1342_v63, %v1555_v8  ;;  %v1548_v15 = vmax.f32 %v1341_v9, %v1547_v5  ;;  %v1418_v22 = vrot.slane %v1408_v6, %v2206_v4 }
 0x1a7   :  { %v1276_v3 = vcombine.high %v1267_v58, %v1267_v58  ;;  %v1475_v2 = vcombine.low %v1267_v58, %v1275_v59  ;;  %v1483_v20 = vrot.slane %v1474_v60, %v2206_v4  ;;  %v1504_v19 = vrot.slane %v1274_v11, %v2206_v4  ;;  %v1579_v60 = vld [vmem:[%s2436_s3] sm:$0x3] }
 0x1a8   :  { %v1442_v17 = vcombine.low %v1432_v7, %v1439_v13  ;;  %v1443_v24 = vcombine.high %v1432_v7, %v1439_v13  ;;  %v1440_v27 = vcombine.low %v1418_v22, %v1425_v12  ;;  %v1441_v28 = vcombine.high %v1418_v22, %v1425_v12 }
 0x1a9   :  { %v1476_v18 = vcombine.low %v1276_v3, %v1260_v10  ;;  %v1490_v21 = vrot.slane %v1475_v2, %v2206_v4  ;;  %v1557_v29 = vrot.slane %v1556_v14, 4  ;;  %v1549_v30 = vrot.slane %v1548_v15, 4 }
 0x1aa   :  { %v1464_v33 = vrot.slane %v1442_v17, %v2206_v4  ;;  %v1471_v34 = vrot.slane %v1443_v24, %v2206_v4  ;;  %v1450_v38 = vrot.slane %v1440_v27, %v2206_v4  ;;  %v1457_v39 = vrot.slane %v1441_v28, %v2206_v4  ;;  %v1720_v17 = vld [vmem:[#allocation7 + $0x20] sm:$0xff]  ;;  %v1719_v24 = vld [vmem:[#allocation7 + $0x18] sm:$0xff]  ;;  %v1845_v27 = vld [vmem:[%s2438_s5] ss:$0 sm:$0xff]  ;;  %s2019_s5 = scalar_lea.vmem %s1823_s21, 32 }
 0x1ab   :  { %v1497_v23 = vrot.slane %v1476_v18, %v2206_v4  ;;  %v1505_v25 = vcombine.low %v1483_v20, %v1490_v21  ;;  %v1506_v26 = vcombine.high %v1483_v20, %v1490_v21  ;;  %v1558_v40 = vmax.f32 %v1556_v14, %v1557_v29  ;;  %1923 = vmatpush3.msra.mxu0 %v1720_v17  ;;  %p2020_p1 = scmp.ne.s32.totalorder %s1823_s21, %s2019_s5  ;;  %p2025_p3 = scmp.lt.s32.totalorder %s2019_s5, %s2019_s5 }
 0x1ac   :  { %v1550_v41 = vmax.f32 %v1548_v15, %v1549_v30  ;;  %v1472_v44 = vcombine.low %v1450_v38, %v1464_v33  ;;  %v1473_v45 = vcombine.low %v1457_v39, %v1471_v34  ;;  %v1587_v62 = vsub.s32 1, %v2200_v61  ;;  %1924 = vmatprep.subr.mxu0 %v2052_v0 }
 0x1ad   :  { %v1507_v31 = vcombine.low %v1497_v23, %v1504_v19  ;;  %v1508_v32 = vcombine.high %v1497_v23, %v1504_v19  ;;  %v1515_v35 = vrot.slane %v1505_v25, %v2206_v4  ;;  %v1522_v36 = vrot.slane %v1506_v26, %v2206_v4  ;;  %1925 = vmatpush3.msra.mxu0 %v1719_v24  ;;  %v1718_v23 = vld [vmem:[#allocation7 + $0x10] sm:$0xff]  ;;  %v1717_v19 = vld [vmem:[#allocation7 + $0x8] sm:$0xff]  ;;  %v1716_v25 = vld [vmem:[#allocation7] sm:$0xff]  ;;  %p2026_p4 = por %p2025_p3, %p2024_p2 }
 0x1ae   :  { %v1559_v48 = vrot.slane %v1558_v40, 2  ;;  %v1551_v16 = vrot.slane %v1550_v41, 2  ;;  %v1583_v63 = vsub.s32 0, %v2200_v61  ;;  %v1588_v9 = vrot.slane %v1579_v60, %v1587_v62  ;;  %1926 = vmatprep.subr.mxu0 %v2052_v0 }
 0x1af   :  { %v1529_v37 = vrot.slane %v1507_v31, %v2206_v4  ;;  %v1536_v1 = vrot.slane %v1508_v32, %v2206_v4  ;;  %1927 = vmatpush3.msra.mxu0 %v1718_v23  ;;  %v1846_v32 = vld [vmem:[%s2440_s7] ss:$0 sm:$0xff]  ;;  %p2027_p5 = pnand %p2026_p4, %p2020_p1 }
 0x1b0   :  { %v1560_v53 = vmax.f32 %v1558_v40, %v1559_v48  ;;  %v1552_v55 = vmax.f32 %v1550_v41, %v1551_v16  ;;  %v1584_v10 = vrot.slane %v1579_v60, %v1583_v63  ;;  %1928 = vmatprep.subr.mxu0 %v2052_v0 }
 0x1b1   :  { %v1537_v42 = vcombine.low %v1515_v35, %v1529_v37  ;;  %v1538_v43 = vcombine.low %v1522_v36, %v1536_v1  ;;  %1929 = vmatpush3.msra.mxu0 %v1717_v19 }
 0x1b2   :  { %v1561_v58 = vrot.slane %v1560_v53, 1  ;;  %v1553_v5 = vrot.slane %v1552_v55, 1  ;;  %1930 = vmatprep.subr.mxu0 %v2052_v0 }
 0x1b3   :  { %v1571_v46 = vsel %vm79_vm1, %v1538_v43, -inf  ;;  %v1563_v47 = vsel %vm79_vm1, %v1537_v42, -inf  ;;  %1931 = vmatpush3.msra.mxu0 %v1716_v25 }
 0x1b4   :  { %v1572_v49 = vmax.f32 %v1473_v45, %v1571_v46  ;;  %v1564_v50 = vmax.f32 %v1472_v44, %v1563_v47  ;;  %v1562_v11 = vmax.f32 %v1560_v53, %v1561_v58  ;;  %v1554_v2 = vmax.f32 %v1552_v55, %v1553_v5 }
 0x1b6   :  { %v1573_v51 = vrot.slane %v1572_v49, 4  ;;  %v1565_v52 = vrot.slane %v1564_v50, 4  ;;  %v1592_v61 = vadd.f32 %v1588_v9, %v1562_v11  ;;  %v1591_v18 = vadd.f32 %v1584_v10, %v1554_v2 }
 0x1b8   :  { %v1574_v54 = vmax.f32 %v1572_v49, %v1573_v51  ;;  %v1566_v4 = vmax.f32 %v1564_v50, %v1565_v52 }
 0x1ba   :  { %v1575_v56 = vrot.slane %v1574_v54, 2  ;;  %v1567_v57 = vrot.slane %v1566_v4, 2 }
 0x1bc   :  { %v1576_v59 = vmax.f32 %v1574_v54, %v1575_v56  ;;  %v1568_v6 = vmax.f32 %v1566_v4, %v1567_v57 }
 0x1be   :  { %v1577_v7 = vrot.slane %v1576_v59, 1  ;;  %v1569_v8 = vrot.slane %v1568_v6, 1 }
 0x1c0   :  { %v1578_v3 = vmax.f32 %v1576_v59, %v1577_v7  ;;  %v1570_v12 = vmax.f32 %v1568_v6, %v1569_v8 }
 0x1c2   :  { %v1594_v13 = vadd.f32 %v1588_v9, %v1578_v3  ;;  %v1593_v14 = vadd.f32 %v1584_v10, %v1570_v12 }
 0x1c4   :  { %v1641_v15 = vrot.slane %v1594_v13, 7  ;;  %v1638_v20 = vrot.slane %v1593_v14, 7 }
 0x1c6   :  { %v1642_v21 = vsel %vm1639_vm11, %v1641_v15, %v1592_v61  ;;  %v1640_v22 = vsel %vm1639_vm11, %v1638_v20, %v1591_v18 }
 0x1c7   :  { %1709 = vmatprep.mubr.f32.mxu1 %v1642_v21 }
 0x1c8   :  { %1710 = vmatmul.mubr.f32.vlgmr.msra.gmra.mxu1 %v1640_v22 }
 0x288   :  { %v1880_v26 = vpop.f32.mrf.mxu1 }
 0x28a   :  { %v1881_v28 = vpop.f32.mrf.mxu1 }
 0x28b   :  { %v1882_v29 = vadd.f32 %v1881_v28, %v1880_v26 }
 0x28d   :  { %v1712_v30 = vadd.f32 %v1882_v29, %v1845_v27 }
 0x28f   :  { %v1715_v31 = vmax.f32 %v1712_v30, 0.0 }
 0x291   :  { %1933 = vmatmul.mubr.f32.vlgmr.msra.gmra.mxu0 %v1715_v31 }
 0x351   :  { %v1805_v33 = vpop.f32.mrf.mxu0 }
 0x352   :  { %v1806_v34 = vadd.f32 %v1846_v32, %v1805_v33 }
 0x353   :  { %v1934_v35 = vpop.f32.mrf.mxu0 }
 0x354   :  { %v1847_v36 = vmul.f32 -1.442695, %v1806_v34 }
 0x356   :  { %1955 = vpow2.f32 %v1847_v36 }
 0x363   :  { %v1956_v0 = vpop.eup %1955 }
 0x364   :  { %v1812_v37 = vadd.f32 1.0, %v1956_v0 }
 0x366   :  { %1957 = vrcp.f32 %v1812_v37 }
 0x373   :  { %v1958_v1 = vpop.eup %1957 }
 0x374   :  { %1815 = vst [vmem:[#allocation8] sm:$0x3] %v1958_v1 }
 0x375   :  { %2030 = shalt.err (!%p2027_p5)
}
 0x376   :  { %1825 = dma.vmem_to_hbm [thread:$0]  %s1823_s21, 32, %s2441_s8, [#allocation4]  }
 0x377   :  { %2043 = dma.done.wait [#allocation4], 32  }
 0x378   :  { %2044 = vsyncadd [#allocation4], 4294967264 }
 0x379   :  { %1829 = vsyncpa [#allocation3], 1 }
 0x37a   :  { %1830 = vsyncpa [#allocation6], 1 }
 0x37b   :  { %1831 = vsyncpa [#allocation4], 1 }

</bundles_post_ra>
